<compile_context>
chip_gen: v6e
topology: v6e:2x2x1
jax: 0.10.0
libtpu: 0.0.40
codegen_flags: <defaults>
</compile_context>

<pallas_src>
import math

import jax
import jax.numpy as jnp
from jax.experimental import pallas as pl
from jax.experimental.pallas import tpu as pltpu

_LOG_SQRT_2PI = 0.5 * math.log(2.0 * math.pi)


def _round_up(x, m):
    return ((x + m - 1) // m) * m


# --------------------------------------------------------------------------- #
# Kernel
# --------------------------------------------------------------------------- #
def _rnn_agent_kernel(xin_ref,                     # (bb, Ip+Hp+Op)  [x | h | eps]
                      w1_ref, b1_ref,              # (Ip, Hp), (1, Hp)
                      wgx_ref, wgh_ref, bg_ref,    # (Hp, 4Hp), (Hp, 4Hp), (1, 4Hp)
                      whd_ref, bhd_ref,            # (Hp, 2Op), (1, 2Op)
                      bound_ref,                   # SMEM (1, 1) scalar
                      out_ref):                    # (bb, 2Op+Hp) [act | logp | h]
    Ip = w1_ref.shape[0]
    Hp = w1_ref.shape[1]
    Op = whd_ref.shape[1] // 2
    wd = w1_ref.dtype                              # matmul operand dtype (bf16/f32)

    # All segment offsets are multiples of 128 -> whole-vreg slices.
    x = xin_ref[:, 0:Ip]
    h_in = xin_ref[:, Ip:Ip + Hp]
    eps = xin_ref[:, Ip + Hp:Ip + Hp + Op]
    action_bound = bound_ref[0, 0]

    # ---- fc1 + ReLU ---------------------------------------------------------
    xh = jnp.maximum(
        jnp.dot(x.astype(wd), w1_ref[...], preferred_element_type=jnp.float32)
        + b1_ref[...],
        0.0)

    # ---- GRUCell: two MXU passes over 128-aligned gate groups [r|z|gi_n|gh_n]
    g = (jnp.dot(xh.astype(wd), wgx_ref[...], preferred_element_type=jnp.float32)
         + jnp.dot(h_in.astype(wd), wgh_ref[...], preferred_element_type=jnp.float32)
         + bg_ref[...])
    rz = jax.nn.sigmoid(g[:, 0:2 * Hp])            # one fused pass over r and z
    r = rz[:, 0:Hp]
    z = rz[:, Hp:2 * Hp]
    n = jnp.tanh(g[:, 2 * Hp:3 * Hp] + r * g[:, 3 * Hp:4 * Hp])
    h_new = (1.0 - z) * n + z * h_in               # convex update stays f32

    # ---- fused heads: [mu | pre_std], each Op (=128k) lanes wide ------------
    heads = (jnp.dot(h_new.astype(wd), whd_ref[...],
                     preferred_element_type=jnp.float32) + bhd_ref[...])
    mu = heads[:, 0:Op]
    std = jax.nn.softplus(heads[:, Op:2 * Op])

    # ---- reparameterized Normal sample + log_prob ---------------------------
    sample = mu + std * eps
    # log N(sample | mu, std) with (sample - mu)/std == eps
    log_prob = -0.5 * (eps * eps) - jnp.log(std) - _LOG_SQRT_2PI

    actions = jnp.tanh(sample)
    # NOTE: the PyTorch reference applies tanh to the already-squashed actions
    # inside the Jacobian term; reproduce that exactly.
    t = jnp.tanh(actions)
    log_prob = log_prob - jnp.log1p(1e-7 - t * t)
    actions = actions * action_bound

    # ---- lane-dense output slab, three vreg-aligned unmasked stores ---------
    out_ref[:, 0:Op] = actions
    out_ref[:, Op:2 * Op] = log_prob
    out_ref[:, 2 * Op:2 * Op + Hp] = h_new


# --------------------------------------------------------------------------- #
# Parameter fusion (done once, not per call)
# --------------------------------------------------------------------------- #
def fuse_params(params, matmul_dtype=jnp.bfloat16):
    """Fold fc1 / GRU / head weights into 128-lane-aligned fused layouts.

    bf16 matmul operands are the default on all generations (MXU supports bf16 on
    v5e/v6e/v7x); accumulation and all element-wise math stay f32.  Pass
    matmul_dtype=jnp.float32 for a bit-tight f32 path.
    """
    in_dim, H = params["w1"].shape
    obs = params["wmu"].shape[1]
    Ip = _round_up(in_dim, 128)
    Hp = _round_up(H, 128)
    Op = _round_up(obs, 128)

    def pad2(a, rows, cols):
        a = a.astype(jnp.float32)
        return jnp.pad(a, ((0, rows - a.shape[0]), (0, cols - a.shape[1])))

    wih, whh = params["wih"], params["whh"]        # (H, 3H), gate order (r, z, n)
    bih, bhh = params["bih"], params["bhh"]        # (1, 3H)
    zH = jnp.zeros((H, H), jnp.float32)

    def gate_cols(w_r, w_z, w_n1, w_n2):
        # each (H,H) block -> (Hp,Hp), concatenated along lanes -> (Hp, 4Hp)
        return jnp.concatenate([pad2(w_r, Hp, Hp), pad2(w_z, Hp, Hp),
                                pad2(w_n1, Hp, Hp), pad2(w_n2, Hp, Hp)], axis=1)

    wgx = gate_cols(wih[:, :H], wih[:, H:2 * H], wih[:, 2 * H:], zH)   # xh rows
    wgh = gate_cols(whh[:, :H], whh[:, H:2 * H], zH, whh[:, 2 * H:])   # h_in rows
    bg = jnp.concatenate([
        pad2(bih[:, :H] + bhh[:, :H], 1, Hp),          # r bias folded
        pad2(bih[:, H:2 * H] + bhh[:, H:2 * H], 1, Hp),  # z bias folded
        pad2(bih[:, 2 * H:], 1, Hp),                   # gi_n bias
        pad2(bhh[:, 2 * H:], 1, Hp),                   # gh_n bias (kept separate)
    ], axis=1)                                         # (1, 4Hp)

    whd = jnp.concatenate([pad2(params["wmu"], Hp, Op),
                           pad2(params["wstd"], Hp, Op)], axis=1)      # (Hp, 2Op)
    bhd = jnp.concatenate([pad2(params["bmu"], 1, Op),
                           pad2(params["bstd"], 1, Op)], axis=1)       # (1, 2Op)

    return {
        "w1": pad2(params["w1"], Ip, Hp).astype(matmul_dtype),
        "b1": pad2(params["b1"], 1, Hp),
        "wgx": wgx.astype(matmul_dtype),
        "wgh": wgh.astype(matmul_dtype),
        "bg": bg,
        "whd": whd.astype(matmul_dtype),
        "bhd": bhd,
        "in_dim": in_dim, "hidden_dim": H, "obs_dim": obs,
        "Ip": Ip, "Hp": Hp, "Op": Op,
    }


# --------------------------------------------------------------------------- #
# Forward wrapper
# --------------------------------------------------------------------------- #
def rnn_agent_forward(fused, inputs, hidden_state, eps, action_bound, *, block_b=None):
    """Pallas implementation of RNNAgent.forward on fused params.

    Returns dict with 'actions', 'hidden_state', 'log_prob'.
    """
    H, obs, in_dim = fused["hidden_dim"], fused["obs_dim"], fused["in_dim"]
    Ip, Hp, Op = fused["Ip"], fused["Hp"], fused["Op"]
    B = inputs.shape[0]
    h_in = hidden_state.reshape(-1, H)

    # Batch tile: large tiles to amortize the ~0.35 us/step grid overhead, but
    # keep >= 2 grid steps when B is large so the 'parallel' axis can shard over
    # both TensorCores on v7x.  Cap ~2048 rows to stay well inside the v5e
    # 16 MiB scoped-VMEM default.
    if block_b is None:
        if B <= 1024:
            n_tiles = 1
        else:
            n_tiles = max(2, pl.cdiv(B, 2048))
        block_b = _round_up(pl.cdiv(B, n_tiles), 8)
    else:
        block_b = _round_up(block_b, 8)
    b_pad = _round_up(B, block_b)

    # Single lane-dense input slab [x|pad | h|pad | eps|pad]; the tail-row padding
    # is folded into this one build (no separate jnp.pad pass over the inputs).
    slab_w = Ip + Hp + Op
    slab = jnp.zeros((b_pad, slab_w), jnp.float32)
    slab = slab.at[:B, 0:in_dim].set(inputs.astype(jnp.float32))
    slab = slab.at[:B, Ip:Ip + H].set(h_in.astype(jnp.float32))
    slab = slab.at[:B, Ip + Hp:Ip + Hp + obs].set(eps.astype(jnp.float32))

    bound_arr = jnp.asarray(action_bound, jnp.float32).reshape(1, 1)
    out_w = 2 * Op + Hp                         # multiple of 128 -> unmasked vst/DMA

    grid = (b_pad // block_b,)
    row = lambda i: (i, 0)                      # batch-tiled arrays
    rep = lambda i: (0, 0)                      # weights: constant block -> resident

    # VMEM budgeting (double-buffered batch tiles + resident weights); only set an
    # explicit limit when we'd approach the v5e 16 MiB scoped-VMEM default.
    w_item = jnp.dtype(fused["w1"].dtype).itemsize
    weight_bytes = (Ip * Hp + 2 * Hp * 4 * Hp + Hp * 2 * Op) * w_item \
        + (Hp + 4 * Hp + 2 * Op) * 4
    vmem_est = 2 * weight_bytes + 2 * block_b * (slab_w + out_w) * 4 + (1 << 20)
    compiler_kwargs = dict(dimension_semantics=("parallel",))
    if vmem_est > 12 * 1024 * 1024:
        compiler_kwargs["vmem_limit_bytes"] = int(
            min(vmem_est + (8 << 20), 60 * 1024 * 1024))

    out = pl.pallas_call(
        _rnn_agent_kernel,
        grid=grid,
        in_specs=[
            pl.BlockSpec((block_b, slab_w), row),
            pl.BlockSpec(fused["w1"].shape, rep),
            pl.BlockSpec(fused["b1"].shape, rep),
            pl.BlockSpec(fused["wgx"].shape, rep),
            pl.BlockSpec(fused["wgh"].shape, rep),
            pl.BlockSpec(fused["bg"].shape, rep),
            pl.BlockSpec(fused["whd"].shape, rep),
            pl.BlockSpec(fused["bhd"].shape, rep),
            pl.BlockSpec(memory_space=pltpu.MemorySpace.SMEM),   # action_bound
        ],
        out_specs=pl.BlockSpec((block_b, out_w), row),
        out_shape=jax.ShapeDtypeStruct((b_pad, out_w), jnp.float32),
        compiler_params=pltpu.CompilerParams(**compiler_kwargs),
    )(slab, fused["w1"], fused["b1"], fused["wgx"], fused["wgh"], fused["bg"],
      fused["whd"], fused["bhd"], bound_arr)

    actions = out[:B, 0:obs]
    log_prob = out[:B, Op:Op + obs]
    h_new = out[:B, 2 * Op:2 * Op + H]
    return {"actions": actions, "hidden_state": h_new, "log_prob": log_prob}


# --------------------------------------------------------------------------- #
# Pure-JAX reference (mirrors the PyTorch module) for correctness checking.
# --------------------------------------------------------------------------- #
def _reference_forward(params, inputs, hidden_state, eps, action_bound):
    H = params["w1"].shape[1]
    x = jnp.maximum(inputs @ params["w1"] + params["b1"], 0.0)
    h_in = hidden_state.reshape(-1, H)
    gi = x @ params["wih"] + params["bih"]
    gh = h_in @ params["whh"] + params["bhh"]
    i_r, i_z, i_n = gi[:, :H], gi[:, H:2 * H], gi[:, 2 * H:]
    h_r, h_z, h_n = gh[:, :H], gh[:, H:2 * H], gh[:, 2 * H:]
    r = jax.nn.sigmoid(i_r + h_r)
    z = jax.nn.sigmoid(i_z + h_z)
    n = jnp.tanh(i_n + r * h_n)
    h = (1.0 - z) * n + z * h_in
    mu = h @ params["wmu"] + params["bmu"]
    std = jax.nn.softplus(h @ params["wstd"] + params["bstd"])
    sample = mu + std * eps
    log_prob = -0.5 * eps * eps - jnp.log(std) - _LOG_SQRT_2PI
    actions = jnp.tanh(sample)
    log_prob = log_prob - jnp.log(1.0 - jnp.tanh(actions) ** 2 + 1e-7)
    actions = actions * action_bound
    return {"actions": actions, "hidden_state": h, "log_prob": log_prob}


def init_params(key, input_shape, rnn_hidden_dim, obs_shape):
    """Deterministic synthetic parameter init (uniform, Linear-style scaling)."""
    ks = jax.random.split(key, 10)

    def unif(k, shape, fan_in):
        bound = 1.0 / math.sqrt(fan_in)
        return jax.random.uniform(k, shape, jnp.float32, -bound, bound)

    H = rnn_hidden_dim
    return {
        "w1": unif(ks[0], (input_shape, H), input_shape),
        "b1": unif(ks[1], (1, H), input_shape),
        "wih": unif(ks[2], (H, 3 * H), H),
        "bih": unif(ks[3], (1, 3 * H), H),
        "whh": unif(ks[4], (H, 3 * H), H),
        "bhh": unif(ks[5], (1, 3 * H), H),
        "wmu": unif(ks[6], (H, obs_shape), H),
        "bmu": unif(ks[7], (1, obs_shape), H),
        "wstd": unif(ks[8], (H, obs_shape), H),
        "bstd": unif(ks[9], (1, obs_shape), H),
    }


if __name__ == "__main__":
    # Small shapes implied by the module: flat-vector inputs, GRU hidden state.
    B = 8                 # batch (n_agents * batch)
    input_shape = 24      # obs/input feature dim fed to fc1
    rnn_hidden_dim = 32
    obs_shape = 16        # action dim of fc_mu / fc_std
    epsilon_ball = 0.5    # action_bound

    key = jax.random.PRNGKey(0)
    kp, kx, kh, ke = jax.random.split(key, 4)

    params = init_params(kp, input_shape, rnn_hidden_dim, obs_shape)
    inputs = jax.random.normal(kx, (B, input_shape), jnp.float32)
    hidden_state = jax.random.normal(kh, (B, rnn_hidden_dim), jnp.float32)
    eps = jax.random.normal(ke, (B, obs_shape), jnp.float32)  # rsample noise

    ref = _reference_forward(params, inputs, hidden_state, eps, epsilon_ball)

    # --- tight semantic check: f32 matmul path --------------------------------
    fused_f32 = fuse_params(params, matmul_dtype=jnp.float32)
    out_f32 = rnn_agent_forward(fused_f32, inputs, hidden_state, eps, epsilon_ball)
    jax.block_until_ready(out_f32)
    for k in ("actions", "hidden_state", "log_prob"):
        assert out_f32[k].shape == ref[k].shape, k
        assert bool(jnp.all(jnp.isfinite(out_f32[k]))), k
        assert bool(jnp.allclose(out_f32[k], ref[k], rtol=2e-3, atol=2e-3)), k

    # --- default path: bf16 matmul operands, f32 accumulation / epilogue ------
    fused = fuse_params(params)   # bf16 weights by default
    out = rnn_agent_forward(fused, inputs, hidden_state, eps, epsilon_ball)
    jax.block_until_ready(out)
    assert out["actions"].shape == (B, obs_shape)
    assert out["hidden_state"].shape == (B, rnn_hidden_dim)
    assert out["log_prob"].shape == (B, obs_shape)
    for k in ("actions", "hidden_state", "log_prob"):
        assert bool(jnp.all(jnp.isfinite(out[k]))), k
        # loose tolerance: difference vs the f32 reference is bf16 weight
        # quantization, not kernel error (tight check done above in f32).
        assert bool(jnp.allclose(out[k], ref[k], rtol=1e-1, atol=1e-1)), k

    print("KERNEL_OK")
</pallas_src>

<mosaic_0001>
module attributes {stable_mosaic.version = 11 : i64} {
  func.func @_rnn_agent_kernel(%arg0: i32, %arg1: memref<8x384xf32, #tpu.memory_space<vmem>>, %arg2: memref<128x128xf32, #tpu.memory_space<vmem>>, %arg3: memref<1x128xf32, #tpu.memory_space<vmem>>, %arg4: memref<128x512xf32, #tpu.memory_space<vmem>>, %arg5: memref<128x512xf32, #tpu.memory_space<vmem>>, %arg6: memref<1x512xf32, #tpu.memory_space<vmem>>, %arg7: memref<128x256xf32, #tpu.memory_space<vmem>>, %arg8: memref<1x256xf32, #tpu.memory_space<vmem>>, %arg9: memref<1x1xf32, #tpu.memory_space<smem>>, %arg10: memref<8x384xf32, #tpu.memory_space<vmem>>) attributes {dimension_semantics = [#tpu.dimension_semantics<parallel>], iteration_bounds = array<i64: 1>, scalar_prefetch = 0 : i64, scratch_operands = 0 : i64, tpu.core_type = #tpu.core_type<tc>, window_params = [{transform_indices = @transform_0, window_bounds = array<i64: 8, 384>}, {pipeline_mode = #tpu.pipeline_mode<synchronous>, transform_indices = @transform_1, window_bounds = array<i64: 128, 128>}, {pipeline_mode = #tpu.pipeline_mode<synchronous>, transform_indices = @transform_2, window_bounds = array<i64: 1, 128>}, {pipeline_mode = #tpu.pipeline_mode<synchronous>, transform_indices = @transform_3, window_bounds = array<i64: 128, 512>}, {pipeline_mode = #tpu.pipeline_mode<synchronous>, transform_indices = @transform_4, window_bounds = array<i64: 128, 512>}, {pipeline_mode = #tpu.pipeline_mode<synchronous>, transform_indices = @transform_5, window_bounds = array<i64: 1, 512>}, {pipeline_mode = #tpu.pipeline_mode<synchronous>, transform_indices = @transform_6, window_bounds = array<i64: 128, 256>}, {pipeline_mode = #tpu.pipeline_mode<synchronous>, transform_indices = @transform_7, window_bounds = array<i64: 1, 256>}, {transform_indices = @transform_8, window_bounds = array<i64: 1, 1>}, {transform_indices = @transform_9, window_bounds = array<i64: 8, 384>}]} {
    %c0 = arith.constant 0 : index
    %c0_0 = arith.constant 0 : index
    %0 = vector.load %arg1[%c0, %c0_0] : memref<8x384xf32, #tpu.memory_space<vmem>>, vector<8x128xf32>
    %c0_1 = arith.constant 0 : index
    %c128 = arith.constant 128 : index
    %1 = vector.load %arg1[%c0_1, %c128] : memref<8x384xf32, #tpu.memory_space<vmem>>, vector<8x128xf32>
    %c0_2 = arith.constant 0 : index
    %c256 = arith.constant 256 : index
    %2 = vector.load %arg1[%c0_2, %c256] : memref<8x384xf32, #tpu.memory_space<vmem>>, vector<8x128xf32>
    %c0_3 = arith.constant 0 : index
    %c0_4 = arith.constant 0 : index
    %3 = memref.load %arg9[%c0_3, %c0_4] : memref<1x1xf32, #tpu.memory_space<smem>>
    %c0_5 = arith.constant 0 : index
    %c0_6 = arith.constant 0 : index
    %4 = vector.load %arg2[%c0_5, %c0_6] : memref<128x128xf32, #tpu.memory_space<vmem>>, vector<128x128xf32>
    %cst = arith.constant dense<0.000000e+00> : vector<8x128xf32>
    %5 = tpu.matmul %0, %4, %cst {dimension_numbers = #tpu.dot_dimension_numbers<[1], [0], [0], [1], [0, 0, 1, 1], [], []>} : vector<8x128xf32>, vector<128x128xf32>, vector<8x128xf32> -> vector<8x128xf32>
    %c0_7 = arith.constant 0 : index
    %c0_8 = arith.constant 0 : index
    %6 = vector.load %arg3[%c0_7, %c0_8] : memref<1x128xf32, #tpu.memory_space<vmem>>, vector<1x128xf32>
    %7 = vector.broadcast %6 : vector<1x128xf32> to vector<8x128xf32>
    %8 = arith.addf %5, %7 : vector<8x128xf32>
    %cst_9 = arith.constant 0.000000e+00 : f32
    %9 = vector.broadcast %cst_9 : f32 to vector<8x128xf32>
    %10 = arith.maximumf %8, %9 : vector<8x128xf32>
    %c0_10 = arith.constant 0 : index
    %c0_11 = arith.constant 0 : index
    %11 = vector.load %arg4[%c0_10, %c0_11] : memref<128x512xf32, #tpu.memory_space<vmem>>, vector<128x512xf32>
    %cst_12 = arith.constant dense<0.000000e+00> : vector<8x512xf32>
    %12 = tpu.matmul %10, %11, %cst_12 {dimension_numbers = #tpu.dot_dimension_numbers<[1], [0], [0], [1], [0, 0, 1, 1], [], []>} : vector<8x128xf32>, vector<128x512xf32>, vector<8x512xf32> -> vector<8x512xf32>
    %c0_13 = arith.constant 0 : index
    %c0_14 = arith.constant 0 : index
    %13 = vector.load %arg5[%c0_13, %c0_14] : memref<128x512xf32, #tpu.memory_space<vmem>>, vector<128x512xf32>
    %cst_15 = arith.constant dense<0.000000e+00> : vector<8x512xf32>
    %14 = tpu.matmul %1, %13, %cst_15 {dimension_numbers = #tpu.dot_dimension_numbers<[1], [0], [0], [1], [0, 0, 1, 1], [], []>} : vector<8x128xf32>, vector<128x512xf32>, vector<8x512xf32> -> vector<8x512xf32>
    %15 = arith.addf %12, %14 : vector<8x512xf32>
    %c0_16 = arith.constant 0 : index
    %c0_17 = arith.constant 0 : index
    %16 = vector.load %arg6[%c0_16, %c0_17] : memref<1x512xf32, #tpu.memory_space<vmem>>, vector<1x512xf32>
    %17 = vector.broadcast %16 : vector<1x512xf32> to vector<8x512xf32>
    %18 = arith.addf %15, %17 : vector<8x512xf32>
    %19 = vector.extract_strided_slice %18 {offsets = [0, 0], sizes = [8, 256], strides = [1, 1]} : vector<8x512xf32> to vector<8x256xf32>
    %20 = arith.negf %19 : vector<8x256xf32>
    %21 = math.exp %20 : vector<8x256xf32>
    %cst_18 = arith.constant 1.000000e+00 : f32
    %22 = vector.broadcast %cst_18 : f32 to vector<8x256xf32>
    %23 = arith.addf %22, %21 : vector<8x256xf32>
    %24 = arith.divf %22, %23 : vector<8x256xf32>
    %25 = vector.extract_strided_slice %24 {offsets = [0, 0], sizes = [8, 128], strides = [1, 1]} : vector<8x256xf32> to vector<8x128xf32>
    %26 = vector.extract_strided_slice %24 {offsets = [0, 128], sizes = [8, 128], strides = [1, 1]} : vector<8x256xf32> to vector<8x128xf32>
    %27 = vector.extract_strided_slice %18 {offsets = [0, 256], sizes = [8, 128], strides = [1, 1]} : vector<8x512xf32> to vector<8x128xf32>
    %28 = vector.extract_strided_slice %18 {offsets = [0, 384], sizes = [8, 128], strides = [1, 1]} : vector<8x512xf32> to vector<8x128xf32>
    %29 = arith.mulf %25, %28 : vector<8x128xf32>
    %30 = arith.addf %27, %29 : vector<8x128xf32>
    %31 = math.tanh %30 : vector<8x128xf32>
    %cst_19 = arith.constant 1.000000e+00 : f32
    %32 = vector.broadcast %cst_19 : f32 to vector<8x128xf32>
    %33 = arith.subf %32, %26 : vector<8x128xf32>
    %34 = arith.mulf %33, %31 : vector<8x128xf32>
    %35 = arith.mulf %26, %1 : vector<8x128xf32>
    %36 = arith.addf %34, %35 : vector<8x128xf32>
    %c0_20 = arith.constant 0 : index
    %c0_21 = arith.constant 0 : index
    %37 = vector.load %arg7[%c0_20, %c0_21] : memref<128x256xf32, #tpu.memory_space<vmem>>, vector<128x256xf32>
    %cst_22 = arith.constant dense<0.000000e+00> : vector<8x256xf32>
    %38 = tpu.matmul %36, %37, %cst_22 {dimension_numbers = #tpu.dot_dimension_numbers<[1], [0], [0], [1], [0, 0, 1, 1], [], []>} : vector<8x128xf32>, vector<128x256xf32>, vector<8x256xf32> -> vector<8x256xf32>
    %c0_23 = arith.constant 0 : index
    %c0_24 = arith.constant 0 : index
    %39 = vector.load %arg8[%c0_23, %c0_24] : memref<1x256xf32, #tpu.memory_space<vmem>>, vector<1x256xf32>
    %40 = vector.broadcast %39 : vector<1x256xf32> to vector<8x256xf32>
    %41 = arith.addf %38, %40 : vector<8x256xf32>
    %42 = vector.extract_strided_slice %41 {offsets = [0, 0], sizes = [8, 128], strides = [1, 1]} : vector<8x256xf32> to vector<8x128xf32>
    %43 = vector.extract_strided_slice %41 {offsets = [0, 128], sizes = [8, 128], strides = [1, 1]} : vector<8x256xf32> to vector<8x128xf32>
    %cst_25 = arith.constant 0.000000e+00 : f32
    %44 = vector.broadcast %cst_25 : f32 to vector<8x128xf32>
    %45 = arith.maximumf %43, %44 : vector<8x128xf32>
    %46 = vector.broadcast %cst_25 : f32 to vector<8x128xf32>
    %47 = arith.subf %43, %46 : vector<8x128xf32>
    %48 = arith.cmpf one, %47, %47 : vector<8x128xf32>
    %49 = vector.broadcast %cst_25 : f32 to vector<8x128xf32>
    %50 = arith.addf %43, %49 : vector<8x128xf32>
    %51 = math.absf %47 : vector<8x128xf32>
    %cst_26 = arith.constant 0.000000e+00 : f32
    %52 = vector.broadcast %cst_26 : f32 to vector<8x128xf32>
    %53 = arith.subf %52, %51 : vector<8x128xf32>
    %54 = math.exp %53 : vector<8x128xf32>
    %55 = math.log1p %54 : vector<8x128xf32>
    %56 = arith.addf %45, %55 : vector<8x128xf32>
    %57 = arith.select %48, %50, %56 : vector<8x128xi1>, vector<8x128xf32>
    %58 = arith.mulf %57, %2 : vector<8x128xf32>
    %59 = arith.addf %42, %58 : vector<8x128xf32>
    %60 = arith.mulf %2, %2 : vector<8x128xf32>
    %cst_27 = arith.constant -5.000000e-01 : f32
    %61 = vector.broadcast %cst_27 : f32 to vector<8x128xf32>
    %62 = arith.mulf %61, %60 : vector<8x128xf32>
    %63 = math.log %57 : vector<8x128xf32>
    %64 = arith.subf %62, %63 : vector<8x128xf32>
    %cst_28 = arith.constant 0.918938517 : f32
    %65 = vector.broadcast %cst_28 : f32 to vector<8x128xf32>
    %66 = arith.subf %64, %65 : vector<8x128xf32>
    %67 = math.tanh %59 : vector<8x128xf32>
    %68 = math.tanh %67 : vector<8x128xf32>
    %69 = arith.mulf %68, %68 : vector<8x128xf32>
    %cst_29 = arith.constant 1.000000e-07 : f32
    %70 = vector.broadcast %cst_29 : f32 to vector<8x128xf32>
    %71 = arith.subf %70, %69 : vector<8x128xf32>
    %72 = math.log1p %71 : vector<8x128xf32>
    %73 = arith.subf %66, %72 : vector<8x128xf32>
    %74 = vector.broadcast %3 : f32 to vector<8x128xf32>
    %75 = arith.mulf %67, %74 : vector<8x128xf32>
    %c0_30 = arith.constant 0 : index
    %c0_31 = arith.constant 0 : index
    %76 = vector.load %arg10[%c0_30, %c0_31] : memref<8x384xf32, #tpu.memory_space<vmem>>, vector<8x128xf32>
    tpu.vector_store %arg10[%c0_30, %c0_31], %75 {strides = array<i32>} : memref<8x384xf32, #tpu.memory_space<vmem>>, vector<8x128xf32>,
    %c0_32 = arith.constant 0 : index
    %c128_33 = arith.constant 128 : index
    %77 = vector.load %arg10[%c0_32, %c128_33] : memref<8x384xf32, #tpu.memory_space<vmem>>, vector<8x128xf32>
    tpu.vector_store %arg10[%c0_32, %c128_33], %73 {strides = array<i32>} : memref<8x384xf32, #tpu.memory_space<vmem>>, vector<8x128xf32>,
    %c0_34 = arith.constant 0 : index
    %c256_35 = arith.constant 256 : index
    %78 = vector.load %arg10[%c0_34, %c256_35] : memref<8x384xf32, #tpu.memory_space<vmem>>, vector<8x128xf32>
    tpu.vector_store %arg10[%c0_34, %c256_35], %36 {strides = array<i32>} : memref<8x384xf32, #tpu.memory_space<vmem>>, vector<8x128xf32>,
    return
  }
  func.func @transform_0(%arg0: i32) -> (i32, i32) {
    %c0_i32 = arith.constant 0 : i32
    %c0_i32_0 = arith.constant 0 : i32
    return %arg0, %c0_i32 : i32, i32
  }
  func.func @transform_1(%arg0: i32) -> (i32, i32) {
    %c0_i32 = arith.constant 0 : i32
    %c0_i32_0 = arith.constant 0 : i32
    %c0_i32_1 = arith.constant 0 : i32
    return %c0_i32, %c0_i32_0 : i32, i32
  }
  func.func @transform_2(%arg0: i32) -> (i32, i32) {
    %c0_i32 = arith.constant 0 : i32
    %c0_i32_0 = arith.constant 0 : i32
    %c0_i32_1 = arith.constant 0 : i32
    return %c0_i32, %c0_i32_0 : i32, i32
  }
  func.func @transform_3(%arg0: i32) -> (i32, i32) {
    %c0_i32 = arith.constant 0 : i32
    %c0_i32_0 = arith.constant 0 : i32
    %c0_i32_1 = arith.constant 0 : i32
    return %c0_i32, %c0_i32_0 : i32, i32
  }
  func.func @transform_4(%arg0: i32) -> (i32, i32) {
    %c0_i32 = arith.constant 0 : i32
    %c0_i32_0 = arith.constant 0 : i32
    %c0_i32_1 = arith.constant 0 : i32
    return %c0_i32, %c0_i32_0 : i32, i32
  }
  func.func @transform_5(%arg0: i32) -> (i32, i32) {
    %c0_i32 = arith.constant 0 : i32
    %c0_i32_0 = arith.constant 0 : i32
    %c0_i32_1 = arith.constant 0 : i32
    return %c0_i32, %c0_i32_0 : i32, i32
  }
  func.func @transform_6(%arg0: i32) -> (i32, i32) {
    %c0_i32 = arith.constant 0 : i32
    %c0_i32_0 = arith.constant 0 : i32
    %c0_i32_1 = arith.constant 0 : i32
    return %c0_i32, %c0_i32_0 : i32, i32
  }
  func.func @transform_7(%arg0: i32) -> (i32, i32) {
    %c0_i32 = arith.constant 0 : i32
    %c0_i32_0 = arith.constant 0 : i32
    %c0_i32_1 = arith.constant 0 : i32
    return %c0_i32, %c0_i32_0 : i32, i32
  }
  func.func @transform_8(%arg0: i32) -> (i32, i32) {
    %c0_i32 = arith.constant 0 : i32
    %c0_i32_0 = arith.constant 0 : i32
    %c0_i32_1 = arith.constant 0 : i32
    return %c0_i32, %c0_i32_0 : i32, i32
  }
  func.func @transform_9(%arg0: i32) -> (i32, i32) {
    %c0_i32 = arith.constant 0 : i32
    %c0_i32_0 = arith.constant 0 : i32
    return %arg0, %c0_i32 : i32, i32
  }
}

</mosaic_0001>

<bundles_post_ra>
// kernel: tpu_custom_call.1
= control target key start
LH: loop header
LB: loop body
LE: loop exit
PB: predicated region body
PF: predicated region fallthrough
CT: control target
= control target key end

     0   :  { %15 = vsyncpa [#allocation4], 0  ;;  %s1183_s0 = inlined_call_operand.hbm [shape: f32[8,384], index: 0, kind: input, shape index: {}]   ;;  %s1184_s1 = inlined_call_operand.hbm [shape: f32[128,128], index: 1, kind: input, shape index: {}]   ;;  %s1185_s2 = inlined_call_operand.vmem [shape: f32[1,128], index: 2, kind: input, shape index: {}]   ;;  %s1186_s3 = inlined_call_operand.hbm [shape: f32[128,512], index: 3, kind: input, shape index: {}]   ;;  %s1187_s4 = inlined_call_operand.hbm [shape: f32[128,512], index: 4, kind: input, shape index: {}]   ;;  %s1188_s5 = inlined_call_operand.vmem [shape: f32[1,512], index: 5, kind: input, shape index: {}]   ;;  %s1189_s6 = inlined_call_operand.hbm [shape: f32[128,256], index: 6, kind: input, shape index: {}]   ;;  %s1190_s7 = inlined_call_operand.vmem [shape: f32[1,256], index: 7, kind: input, shape index: {}]   ;;  %s1191_s8 = inlined_call_operand.<no memory space> [shape: f32[1,1], index: 8, kind: input, shape index: {}]   ;;  %s1192_s9 = inlined_call_operand.hbm [shape: f32[8,384], index: 9, kind: output, shape index: {}]  }
   0x1   :  { %16 = vsyncpa [#allocation7], 0 }
   0x2   :  { %17 = vsyncpa [#allocation10], 0 }
   0x3   :  { %18 = vsyncpa [#allocation5], 0  ;;  %s1052_s30 = smov [#allocation6]  }
   0x4   :  { %s34_s10 = sshll.u32 %s1052_s30, 4  ;;  %s35_s10 = int_to_ptr.vmem [resolvable:$true] %s34_s10 }
   0x5   :  { %s932_s11 = scalar_lea.vmem %s35_s10, 2048  ;;  %p937_p1 = scmp.lt.s32.totalorder %s35_s10, %s35_s10 }
   0x6   :  { %p933_p0 = scmp.ne.s32.totalorder %s35_s10, %s932_s11  ;;  %p938_p2 = scmp.lt.s32.totalorder %s932_s11, %s932_s11 }
   0x8   :  { %p939_p3 = por %p938_p2, %p937_p1 }
   0xa   :  { %p940_p4 = pnand %p939_p3, %p933_p0 }
   0xc   :  { %943 = shalt.err (!%p940_p4)
}
   0xd   :  { %s1053_s12 = smov 128   ;;  %s1054_s13 = smov 8  }
   0xe   :  { %40 = dma.hbm_to_vmem [thread:$0]  %s1184_s1, 2048, %s35_s10, [#allocation7], %s1053_s12, %s1053_s12, %s1054_s13  }
   0xf   :  { %s1055_s16 = smov [#allocation9]   ;;  %s1056_s18 = smov [#allocation3]  }
  0x10   :  { %s60_s17 = sshll.u32 %s1055_s16, 4  ;;  %s25_s19 = sshll.u32 %s1056_s18, 4  ;;  %s61_s17 = int_to_ptr.vmem [resolvable:$true] %s60_s17  ;;  %s26_s19 = int_to_ptr.vmem [resolvable:$true] %s25_s19 }
  0x11   :  { %s952_s20 = scalar_lea.vmem %s61_s17, 8192  ;;  %p957_p6 = scmp.lt.s32.totalorder %s61_s17, %s61_s17 }
  0x12   :  { %p953_p5 = scmp.ne.s32.totalorder %s61_s17, %s952_s20  ;;  %p958_p7 = scmp.lt.s32.totalorder %s952_s20, %s952_s20 }
  0x14   :  { %p959_p8 = por %p958_p7, %p957_p6 }
  0x16   :  { %p960_p9 = pnand %p959_p8, %p953_p5 }
  0x18   :  { %963 = shalt.err (!%p960_p9)
}
  0x19   :  { %s1057_s21 = smov 512   ;;  %s1058_s22 = smov 32  }
  0x1a   :  { %66 = dma.hbm_to_vmem [thread:$0]  %s1187_s4, 8192, %s61_s17, [#allocation10], %s1057_s21, %s1057_s21, %s1058_s22  }
  0x1b   :  { %s972_s1 = scalar_lea.vmem %s26_s19, 384  ;;  %p977_p11 = scmp.lt.s32.totalorder %s26_s19, %s26_s19 }
  0x1c   :  { %p973_p10 = scmp.ne.s32.totalorder %s26_s19, %s972_s1  ;;  %p978_p12 = scmp.lt.s32.totalorder %s972_s1, %s972_s1 }
  0x1e   :  { %p979_p13 = por %p978_p12, %p977_p11 }
  0x20   :  { %p980_p0 = pnand %p979_p13, %p973_p10 }
  0x22   :  { %983 = shalt.err (!%p980_p0)
}
  0x23   :  { %28 = dma.hbm_to_vmem [thread:$0]  %s1183_s0, 384, %s26_s19, [#allocation4]  }
  0x24   :  { %s1059_s27 = smov [#allocation8]   ;;  %s1060_s29 = smov [#allocation11]  }
  0x25   :  { %s48_s28 = sshll.u32 %s1059_s27, 4  ;;  %s74_s30 = sshll.u32 %s1060_s29, 4  ;;  %s49_s28 = int_to_ptr.vmem [resolvable:$true] %s48_s28  ;;  %s75_s30 = int_to_ptr.vmem [resolvable:$true] %s74_s30 }
  0x26   :  { %s992_s10 = scalar_lea.vmem %s49_s28, 8192  ;;  %p997_p2 = scmp.lt.s32.totalorder %s49_s28, %s49_s28 }
  0x27   :  { %p993_p1 = scmp.ne.s32.totalorder %s49_s28, %s992_s10  ;;  %p998_p3 = scmp.lt.s32.totalorder %s992_s10, %s992_s10 }
  0x29   :  { %p999_p4 = por %p998_p3, %p997_p2 }
  0x2b   :  { %p1000_p5 = pnand %p999_p4, %p993_p1 }
  0x2d   :  { %1003 = shalt.err (!%p1000_p5)
}
  0x2e   :  { %54 = dma.hbm_to_vmem [thread:$0]  %s1186_s3, 8192, %s49_s28, [#allocation7], %s1057_s21, %s1057_s21, %s1058_s22  }
  0x2f   :  { %s1012_s12 = scalar_lea.vmem %s75_s30, 4096  ;;  %p1017_p7 = scmp.lt.s32.totalorder %s75_s30, %s75_s30 }
  0x30   :  { %p1013_p6 = scmp.ne.s32.totalorder %s75_s30, %s1012_s12  ;;  %p1018_p8 = scmp.lt.s32.totalorder %s1012_s12, %s1012_s12 }
  0x32   :  { %p1019_p9 = por %p1018_p8, %p1017_p7 }
  0x34   :  { %p1020_p10 = pnand %p1019_p9, %p1013_p6 }
  0x36   :  { %1023 = shalt.err (!%p1020_p10)
}
  0x37   :  { %s1061_s0 = smov 256   ;;  %s1062_s13 = smov 16  }
  0x38   :  { %80 = dma.hbm_to_vmem [thread:$0]  %s1189_s6, 4096, %s75_s30, [#allocation10], %s1061_s0, %s1061_s0, %s1062_s13  }
  0x39   :  { %1044 = dma.done.wait [#allocation4], 384  }
  0x3a   :  { %1045 = vsyncadd [#allocation4], 4294966912 }
  0x3b   :  { %1046 = dma.done.wait [#allocation7], 10240  }
  0x3c   :  { %1047 = vsyncadd [#allocation7], 4294957056 }
  0x3d   :  { %1048 = dma.done.wait [#allocation10], 12288  }
  0x3e   :  { %1049 = vsyncadd [#allocation10], 4294955008  ;;  %v1063_v0 = vmov 0.0   ;;  %vm1064_vm0 = vmmov 0   ;;  %v119_v1 = vld [vmem:[#allocation6 + $0x78] sm:$0xff]  ;;  %v118_v2 = vld [vmem:[#allocation6 + $0x70] sm:$0xff] }
  0x3f   :  { %853 = vmatprep.subr.mxu0 %v1063_v0  ;;  %885 = vmatprep.mubr.msk.f32.mxu0 %vm1064_vm0, %v1063_v0  ;;  %v117_v3 = vld [vmem:[#allocation6 + $0x68] sm:$0xff]  ;;  %v116_v4 = vld [vmem:[#allocation6 + $0x60] sm:$0xff]  ;;  %v115_v6 = vld [vmem:[#allocation6 + $0x58] sm:$0xff] }
  0x40   :  { %390 = vmatprep.mubr.f32.mxu1 %v1063_v0  ;;  %854 = vmatpush3.msra.mxu0 %v119_v1  ;;  %v323_v5 = vld [vmem:[#allocation9 + $0x1e8] sm:$0xff]  ;;  %v322_v7 = vld [vmem:[#allocation9 + $0x1e0] sm:$0xff]  ;;  %v114_v10 = vld [vmem:[#allocation6 + $0x50] sm:$0xff] }
  0x41   :  { %855 = vmatprep.subr.mxu0 %v1063_v0  ;;  %326 = vmatprep.subr.mxu1 %v323_v5  ;;  %v319_v8 = vld [vmem:[#allocation9 + $0x1c8] sm:$0xff]  ;;  %v318_v9 = vld [vmem:[#allocation9 + $0x1c0] sm:$0xff]  ;;  %v111_v20 = vld [vmem:[#allocation6 + $0x38] sm:$0xff] }
  0x42   :  { %856 = vmatpush3.msra.mxu0 %v118_v2  ;;  %327 = vmatpush1.msra.mxu1 %v322_v7  ;;  %v315_v11 = vld [vmem:[#allocation9 + $0x1a8] sm:$0xff]  ;;  %v314_v12 = vld [vmem:[#allocation9 + $0x1a0] sm:$0xff]  ;;  %v110_v23 = vld [vmem:[#allocation6 + $0x30] sm:$0xff] }
  0x43   :  { %857 = vmatprep.subr.mxu0 %v1063_v0  ;;  %328 = vmatprep.subr.mxu1 %v319_v8  ;;  %v311_v13 = vld [vmem:[#allocation9 + $0x188] sm:$0xff]  ;;  %v310_v15 = vld [vmem:[#allocation9 + $0x180] sm:$0xff]  ;;  %v107_v32 = vld [vmem:[#allocation6 + $0x18] sm:$0xff] }
  0x44   :  { %858 = vmatpush3.msra.mxu0 %v117_v3  ;;  %329 = vmatpush1.msra.mxu1 %v318_v9  ;;  %v113_v14 = vld [vmem:[#allocation6 + $0x48] sm:$0xff]  ;;  %v112_v17 = vld [vmem:[#allocation6 + $0x40] sm:$0xff]  ;;  %v106_v35 = vld [vmem:[#allocation6 + $0x10] sm:$0xff] }
  0x45   :  { %859 = vmatprep.subr.mxu0 %v1063_v0  ;;  %330 = vmatprep.subr.mxu1 %v315_v11  ;;  %v307_v16 = vld [vmem:[#allocation9 + $0x168] sm:$0xff]  ;;  %v306_v18 = vld [vmem:[#allocation9 + $0x160] sm:$0xff]  ;;  %v325_v44 = vld [vmem:[#allocation9 + $0x1f8] sm:$0xff] }
  0x46   :  { %860 = vmatpush3.msra.mxu0 %v116_v4  ;;  %331 = vmatpush1.msra.mxu1 %v314_v12  ;;  %v303_v19 = vld [vmem:[#allocation9 + $0x148] sm:$0xff]  ;;  %v302_v21 = vld [vmem:[#allocation9 + $0x140] sm:$0xff]  ;;  %v324_v45 = vld [vmem:[#allocation9 + $0x1f0] sm:$0xff] }
  0x47   :  { %861 = vmatprep.subr.mxu0 %v1063_v0  ;;  %332 = vmatprep.subr.mxu1 %v311_v13  ;;  %v299_v22 = vld [vmem:[#allocation9 + $0x128] sm:$0xff]  ;;  %v298_v24 = vld [vmem:[#allocation9 + $0x120] sm:$0xff]  ;;  %v321_v47 = vld [vmem:[#allocation9 + $0x1d8] sm:$0xff] }
  0x48   :  { %862 = vmatpush3.msra.mxu0 %v115_v6  ;;  %333 = vmatpush1.msra.mxu1 %v310_v15  ;;  %v295_v25 = vld [vmem:[#allocation9 + $0x108] sm:$0xff]  ;;  %v294_v27 = vld [vmem:[#allocation9 + $0x100] sm:$0xff]  ;;  %v320_v49 = vld [vmem:[#allocation9 + $0x1d0] sm:$0xff] }
  0x49   :  { %863 = vmatprep.subr.mxu0 %v1063_v0  ;;  %334 = vmatprep.subr.mxu1 %v307_v16  ;;  %v109_v26 = vld [vmem:[#allocation6 + $0x28] sm:$0xff]  ;;  %v108_v29 = vld [vmem:[#allocation6 + $0x20] sm:$0xff]  ;;  %v317_v51 = vld [vmem:[#allocation9 + $0x1b8] sm:$0xff] }
  0x4a   :  { %864 = vmatpush3.msra.mxu0 %v114_v10  ;;  %335 = vmatpush1.msra.mxu1 %v306_v18  ;;  %v291_v28 = vld [vmem:[#allocation9 + $0xe8] sm:$0xff]  ;;  %v290_v30 = vld [vmem:[#allocation9 + $0xe0] sm:$0xff]  ;;  %v316_v53 = vld [vmem:[#allocation9 + $0x1b0] sm:$0xff] }
  0x4b   :  { %865 = vmatprep.subr.mxu0 %v1063_v0  ;;  %336 = vmatprep.subr.mxu1 %v303_v19  ;;  %v287_v31 = vld [vmem:[#allocation9 + $0xc8] sm:$0xff]  ;;  %v286_v33 = vld [vmem:[#allocation9 + $0xc0] sm:$0xff]  ;;  %v313_v55 = vld [vmem:[#allocation9 + $0x198] sm:$0xff] }
  0x4c   :  { %866 = vmatpush3.msra.mxu0 %v113_v14  ;;  %337 = vmatpush1.msra.mxu1 %v302_v21  ;;  %v283_v34 = vld [vmem:[#allocation9 + $0xa8] sm:$0xff]  ;;  %v282_v36 = vld [vmem:[#allocation9 + $0xa0] sm:$0xff]  ;;  %v312_v57 = vld [vmem:[#allocation9 + $0x190] sm:$0xff] }
  0x4d   :  { %867 = vmatprep.subr.mxu0 %v1063_v0  ;;  %338 = vmatprep.subr.mxu1 %v299_v22  ;;  %v279_v37 = vld [vmem:[#allocation9 + $0x88] sm:$0xff]  ;;  %v278_v39 = vld [vmem:[#allocation9 + $0x80] sm:$0xff]  ;;  %v1149_v58 = vld [vmem:[#allocation3 + $0x8] sm:$0xff] }
  0x4e   :  { %868 = vmatpush3.msra.mxu0 %v112_v17  ;;  %339 = vmatpush1.msra.mxu1 %v298_v24  ;;  %v105_v38 = vld [vmem:[#allocation6 + $0x8] sm:$0xff]  ;;  %v104_v41 = vld [vmem:[#allocation6] sm:$0xff]  ;;  %v309_v59 = vld [vmem:[#allocation9 + $0x178] sm:$0xff] }
  0x4f   :  { %869 = vmatprep.subr.mxu0 %v1063_v0  ;;  %340 = vmatprep.subr.mxu1 %v295_v25  ;;  %v275_v40 = vld [vmem:[#allocation9 + $0x68] sm:$0xff]  ;;  %v274_v42 = vld [vmem:[#allocation9 + $0x60] sm:$0xff]  ;;  %v308_v60 = vld [vmem:[#allocation9 + $0x170] sm:$0xff] }
  0x50   :  { %870 = vmatpush3.msra.mxu0 %v111_v20  ;;  %341 = vmatpush1.msra.mxu1 %v294_v27  ;;  %v100_v43 = vld [vmem:[#allocation3] sm:$0xff]  ;;  %v270_v48 = vld [vmem:[#allocation9 + $0x40] sm:$0xff]  ;;  %v305_v62 = vld [vmem:[#allocation9 + $0x158] sm:$0xff] }
  0x51   :  { %871 = vmatprep.subr.mxu0 %v1063_v0  ;;  %342 = vmatprep.subr.mxu1 %v291_v28  ;;  %v271_v46 = vld [vmem:[#allocation9 + $0x48] sm:$0xff]  ;;  %v266_v52 = vld [vmem:[#allocation9 + $0x20] sm:$0xff]  ;;  %v304_v1 = vld [vmem:[#allocation9 + $0x150] sm:$0xff] }
  0x52   :  { %872 = vmatpush3.msra.mxu0 %v110_v23  ;;  %343 = vmatpush1.msra.mxu1 %v290_v30  ;;  %v267_v50 = vld [vmem:[#allocation9 + $0x28] sm:$0xff]  ;;  %v262_v56 = vld [vmem:[#allocation9] sm:$0xff]  ;;  %v301_v3 = vld [vmem:[#allocation9 + $0x138] sm:$0xff] }
  0x53   :  { %873 = vmatprep.subr.mxu0 %v1063_v0  ;;  %344 = vmatprep.subr.mxu1 %v287_v31  ;;  %v263_v54 = vld [vmem:[#allocation9 + $0x8] sm:$0xff]  ;;  %v258_v63 = vld [vmem:[#allocation8 + $0x1e0] sm:$0xff]  ;;  %v300_v5 = vld [vmem:[#allocation9 + $0x130] sm:$0xff] }
  0x54   :  { %874 = vmatpush3.msra.mxu0 %v109_v26  ;;  %345 = vmatpush1.msra.mxu1 %v286_v33  ;;  %v259_v61 = vld [vmem:[#allocation8 + $0x1e8] sm:$0xff]  ;;  %v254_v4 = vld [vmem:[#allocation8 + $0x1c0] sm:$0xff]  ;;  %v297_v7 = vld [vmem:[#allocation9 + $0x118] sm:$0xff] }
  0x55   :  { %875 = vmatprep.subr.mxu0 %v1063_v0  ;;  %346 = vmatprep.subr.mxu1 %v283_v34  ;;  %v255_v2 = vld [vmem:[#allocation8 + $0x1c8] sm:$0xff]  ;;  %v250_v8 = vld [vmem:[#allocation8 + $0x1a0] sm:$0xff]  ;;  %v296_v9 = vld [vmem:[#allocation9 + $0x110] sm:$0xff] }
  0x56   :  { %876 = vmatpush3.msra.mxu0 %v108_v29  ;;  %347 = vmatpush1.msra.mxu1 %v282_v36  ;;  %v251_v6 = vld [vmem:[#allocation8 + $0x1a8] sm:$0xff]  ;;  %v293_v11 = vld [vmem:[#allocation9 + $0xf8] sm:$0xff]  ;;  %v246_v12 = vld [vmem:[#allocation8 + $0x180] sm:$0xff] }
  0x57   :  { %877 = vmatprep.subr.mxu0 %v1063_v0  ;;  %348 = vmatprep.subr.mxu1 %v279_v37  ;;  %v247_v10 = vld [vmem:[#allocation8 + $0x188] sm:$0xff]  ;;  %v292_v13 = vld [vmem:[#allocation9 + $0xf0] sm:$0xff]  ;;  %v289_v15 = vld [vmem:[#allocation9 + $0xd8] sm:$0xff] }
  0x58   :  { %878 = vmatpush3.msra.mxu0 %v107_v32  ;;  %349 = vmatpush1.msra.mxu1 %v278_v39  ;;  %v243_v14 = vld [vmem:[#allocation8 + $0x168] sm:$0xff]  ;;  %v242_v16 = vld [vmem:[#allocation8 + $0x160] sm:$0xff]  ;;  %v288_v17 = vld [vmem:[#allocation9 + $0xd0] sm:$0xff] }
  0x59   :  { %879 = vmatprep.subr.mxu0 %v1063_v0  ;;  %350 = vmatprep.subr.mxu1 %v275_v40  ;;  %v239_v18 = vld [vmem:[#allocation8 + $0x148] sm:$0xff]  ;;  %v285_v19 = vld [vmem:[#allocation9 + $0xb8] sm:$0xff]  ;;  %v238_v20 = vld [vmem:[#allocation8 + $0x140] sm:$0xff] }
  0x5a   :  { %880 = vmatpush3.msra.mxu0 %v106_v35  ;;  %351 = vmatpush1.msra.mxu1 %v274_v42  ;;  %v284_v21 = vld [vmem:[#allocation9 + $0xb0] sm:$0xff]  ;;  %v235_v22 = vld [vmem:[#allocation8 + $0x128] sm:$0xff]  ;;  %v281_v23 = vld [vmem:[#allocation9 + $0x98] sm:$0xff] }
  0x5b   :  { %881 = vmatprep.subr.mxu0 %v1063_v0  ;;  %352 = vmatprep.subr.mxu1 %v271_v46  ;;  %v234_v24 = vld [vmem:[#allocation8 + $0x120] sm:$0xff]  ;;  %v280_v25 = vld [vmem:[#allocation9 + $0x90] sm:$0xff]  ;;  %v231_v26 = vld [vmem:[#allocation8 + $0x108] sm:$0xff] }
  0x5c   :  { %882 = vmatpush3.msra.mxu0 %v105_v38  ;;  %353 = vmatpush1.msra.mxu1 %v270_v48  ;;  %v277_v27 = vld [vmem:[#allocation9 + $0x78] sm:$0xff]  ;;  %v230_v28 = vld [vmem:[#allocation8 + $0x100] sm:$0xff]  ;;  %v276_v29 = vld [vmem:[#allocation9 + $0x70] sm:$0xff] }
  0x5d   :  { %883 = vmatprep.subr.mxu0 %v1063_v0  ;;  %354 = vmatprep.subr.mxu1 %v267_v50  ;;  %v227_v30 = vld [vmem:[#allocation8 + $0xe8] sm:$0xff]  ;;  %v273_v31 = vld [vmem:[#allocation9 + $0x58] sm:$0xff]  ;;  %v226_v32 = vld [vmem:[#allocation8 + $0xe0] sm:$0xff] }
  0x5e   :  { %884 = vmatpush3.msra.mxu0 %v104_v41  ;;  %355 = vmatpush1.msra.mxu1 %v266_v52  ;;  %v272_v33 = vld [vmem:[#allocation9 + $0x50] sm:$0xff]  ;;  %v223_v34 = vld [vmem:[#allocation8 + $0xc8] sm:$0xff]  ;;  %v269_v35 = vld [vmem:[#allocation9 + $0x38] sm:$0xff] }
  0x5f   :  { %886 = vmatmul.mubr.f32.vlgmr.msra.gmra.mxu0 %v100_v43  ;;  %397 = vmatprep.subr.mxu0 %v325_v44  ;;  %v222_v36 = vld [vmem:[#allocation8 + $0xc0] sm:$0xff]  ;;  %v268_v37 = vld [vmem:[#allocation9 + $0x30] sm:$0xff]  ;;  %v219_v38 = vld [vmem:[#allocation8 + $0xa8] sm:$0xff] }
  0x60   :  { %398 = vmatpush1.msra.mxu0 %v324_v45  ;;  %356 = vmatprep.subr.mxu1 %v263_v54  ;;  %v265_v39 = vld [vmem:[#allocation9 + $0x18] sm:$0xff]  ;;  %v218_v40 = vld [vmem:[#allocation8 + $0xa0] sm:$0xff]  ;;  %v264_v41 = vld [vmem:[#allocation9 + $0x10] sm:$0xff] }
  0x61   :  { %399 = vmatprep.subr.mxu0 %v321_v47  ;;  %357 = vmatpush1.msra.mxu1 %v262_v56  ;;  %v215_v42 = vld [vmem:[#allocation8 + $0x88] sm:$0xff]  ;;  %v261_v43 = vld [vmem:[#allocation8 + $0x1f8] sm:$0xff]  ;;  %v260_v44 = vld [vmem:[#allocation8 + $0x1f0] sm:$0xff] }
  0x62   :  { %400 = vmatpush1.msra.mxu0 %v320_v49  ;;  %391 = vmatmul.mubr.f32.vlgmr.msra.gmra.mxu1 %v1149_v58  ;;  %v214_v45 = vld [vmem:[#allocation8 + $0x80] sm:$0xff]  ;;  %v257_v46 = vld [vmem:[#allocation8 + $0x1d8] sm:$0xff]  ;;  %v211_v47 = vld [vmem:[#allocation8 + $0x68] sm:$0xff] }
  0x63   :  { %401 = vmatprep.subr.mxu0 %v317_v51  ;;  %461 = vmatprep.mubr.f32.mxu0 %v1063_v0  ;;  %v256_v48 = vld [vmem:[#allocation8 + $0x1d0] sm:$0xff]  ;;  %v210_v49 = vld [vmem:[#allocation8 + $0x60] sm:$0xff]  ;;  %v253_v50 = vld [vmem:[#allocation8 + $0x1b8] sm:$0xff] }
  0x64   :  { %402 = vmatpush1.msra.mxu0 %v316_v53  ;;  %468 = vmatprep.subr.mxu1 %v259_v61  ;;  %v207_v51 = vld [vmem:[#allocation8 + $0x48] sm:$0xff]  ;;  %v252_v52 = vld [vmem:[#allocation8 + $0x1b0] sm:$0xff]  ;;  %v249_v53 = vld [vmem:[#allocation8 + $0x198] sm:$0xff] }
  0x65   :  { %403 = vmatprep.subr.mxu0 %v313_v55  ;;  %469 = vmatpush1.msra.mxu1 %v258_v63  ;;  %v248_v54 = vld [vmem:[#allocation8 + $0x190] sm:$0xff]  ;;  %v245_v55 = vld [vmem:[#allocation8 + $0x178] sm:$0xff] }
  0x66   :  { %404 = vmatpush1.msra.mxu0 %v312_v57  ;;  %470 = vmatprep.subr.mxu1 %v255_v2  ;;  %v244_v56 = vld [vmem:[#allocation8 + $0x170] sm:$0xff]  ;;  %v241_v57 = vld [vmem:[#allocation8 + $0x158] sm:$0xff] }
  0x67   :  { %405 = vmatprep.subr.mxu0 %v309_v59  ;;  %471 = vmatpush1.msra.mxu1 %v254_v4  ;;  %v240_v59 = vld [vmem:[#allocation8 + $0x150] sm:$0xff] }
  0x68   :  { %406 = vmatpush1.msra.mxu0 %v308_v60  ;;  %472 = vmatprep.subr.mxu1 %v251_v6  ;;  %v237_v60 = vld [vmem:[#allocation8 + $0x138] sm:$0xff]  ;;  %v236_v61 = vld [vmem:[#allocation8 + $0x130] sm:$0xff] }
  0x69   :  { %407 = vmatprep.subr.mxu0 %v305_v62  ;;  %473 = vmatpush1.msra.mxu1 %v250_v8  ;;  %v233_v62 = vld [vmem:[#allocation8 + $0x118] sm:$0xff]  ;;  %v232_v63 = vld [vmem:[#allocation8 + $0x110] sm:$0xff] }
  0x6a   :  { %408 = vmatpush1.msra.mxu0 %v304_v1  ;;  %474 = vmatprep.subr.mxu1 %v247_v10  ;;  %v229_v1 = vld [vmem:[#allocation8 + $0xf8] sm:$0xff]  ;;  %v228_v2 = vld [vmem:[#allocation8 + $0xf0] sm:$0xff] }
  0x6b   :  { %409 = vmatprep.subr.mxu0 %v301_v3  ;;  %475 = vmatpush1.msra.mxu1 %v246_v12  ;;  %v225_v3 = vld [vmem:[#allocation8 + $0xd8] sm:$0xff]  ;;  %v224_v4 = vld [vmem:[#allocation8 + $0xd0] sm:$0xff]  ;;  %v206_v12 = vld [vmem:[#allocation8 + $0x40] sm:$0xff] }
  0x6c   :  { %410 = vmatpush1.msra.mxu0 %v300_v5  ;;  %476 = vmatprep.subr.mxu1 %v243_v14  ;;  %v221_v5 = vld [vmem:[#allocation8 + $0xb8] sm:$0xff]  ;;  %v220_v6 = vld [vmem:[#allocation8 + $0xb0] sm:$0xff]  ;;  %v203_v14 = vld [vmem:[#allocation8 + $0x28] sm:$0xff] }
  0x6d   :  { %411 = vmatprep.subr.mxu0 %v297_v7  ;;  %477 = vmatpush1.msra.mxu1 %v242_v16  ;;  %v217_v7 = vld [vmem:[#allocation8 + $0x98] sm:$0xff]  ;;  %v216_v8 = vld [vmem:[#allocation8 + $0x90] sm:$0xff]  ;;  %v202_v16 = vld [vmem:[#allocation8 + $0x20] sm:$0xff] }
  0x6e   :  { %412 = vmatpush1.msra.mxu0 %v296_v9  ;;  %478 = vmatprep.subr.mxu1 %v239_v18  ;;  %v213_v9 = vld [vmem:[#allocation8 + $0x78] sm:$0xff]  ;;  %v212_v10 = vld [vmem:[#allocation8 + $0x70] sm:$0xff]  ;;  %v199_v18 = vld [vmem:[#allocation8 + $0x8] sm:$0xff] }
  0x6f   :  { %413 = vmatprep.subr.mxu0 %v293_v11  ;;  %479 = vmatpush1.msra.mxu1 %v238_v20  ;;  %v209_v11 = vld [vmem:[#allocation8 + $0x58] sm:$0xff]  ;;  %v198_v20 = vld [vmem:[#allocation8] sm:$0xff] }
  0x70   :  { %414 = vmatpush1.msra.mxu0 %v292_v13  ;;  %480 = vmatprep.subr.mxu1 %v235_v22  ;;  %v208_v13 = vld [vmem:[#allocation8 + $0x50] sm:$0xff]  ;;  %v832_v22 = vld [vmem:[%s1185_s2] ss:$0 sm:$0xff] }
  0x71   :  { %415 = vmatprep.subr.mxu0 %v289_v15  ;;  %481 = vmatpush1.msra.mxu1 %v234_v24  ;;  %v205_v15 = vld [vmem:[#allocation8 + $0x38] sm:$0xff] }
  0x72   :  { %416 = vmatpush1.msra.mxu0 %v288_v17  ;;  %482 = vmatprep.subr.mxu1 %v231_v26  ;;  %v204_v17 = vld [vmem:[#allocation8 + $0x30] sm:$0xff] }
  0x73   :  { %417 = vmatprep.subr.mxu0 %v285_v19  ;;  %483 = vmatpush1.msra.mxu1 %v230_v28  ;;  %v201_v19 = vld [vmem:[#allocation8 + $0x18] sm:$0xff]  ;;  %v685_v28 = vld [vmem:[#allocation11 + $0xf0] sm:$0xff] }
  0x74   :  { %418 = vmatpush1.msra.mxu0 %v284_v21  ;;  %484 = vmatprep.subr.mxu1 %v227_v30  ;;  %v200_v21 = vld [vmem:[#allocation8 + $0x10] sm:$0xff]  ;;  %v683_v30 = vld [vmem:[#allocation11 + $0xe0] sm:$0xff] }
  0x75   :  { %419 = vmatprep.subr.mxu0 %v281_v23  ;;  %485 = vmatpush1.msra.mxu1 %v226_v32  ;;  %v681_v32 = vld [vmem:[#allocation11 + $0xd0] sm:$0xff] }
  0x76   :  { %420 = vmatpush1.msra.mxu0 %v280_v25  ;;  %486 = vmatprep.subr.mxu1 %v223_v34  ;;  %v679_v34 = vld [vmem:[#allocation11 + $0xc0] sm:$0xff] }
  0x77   :  { %421 = vmatprep.subr.mxu0 %v277_v27  ;;  %487 = vmatpush1.msra.mxu1 %v222_v36  ;;  %v686_v27 = vld [vmem:[#allocation11 + $0xf8] sm:$0xff]  ;;  %v677_v36 = vld [vmem:[#allocation11 + $0xb0] sm:$0xff] }
  0x78   :  { %422 = vmatpush1.msra.mxu0 %v276_v29  ;;  %488 = vmatprep.subr.mxu1 %v219_v38  ;;  %v684_v29 = vld [vmem:[#allocation11 + $0xe8] sm:$0xff]  ;;  %v674_v38 = vld [vmem:[#allocation11 + $0x98] sm:$0xff] }
  0x79   :  { %423 = vmatprep.subr.mxu0 %v273_v31  ;;  %489 = vmatpush1.msra.mxu1 %v218_v40  ;;  %v682_v31 = vld [vmem:[#allocation11 + $0xd8] sm:$0xff]  ;;  %v672_v40 = vld [vmem:[#allocation11 + $0x88] sm:$0xff] }
  0x7a   :  { %424 = vmatpush1.msra.mxu0 %v272_v33  ;;  %490 = vmatprep.subr.mxu1 %v215_v42  ;;  %v680_v33 = vld [vmem:[#allocation11 + $0xc8] sm:$0xff]  ;;  %v670_v42 = vld [vmem:[#allocation11 + $0x78] sm:$0xff] }
  0x7b   :  { %425 = vmatprep.subr.mxu0 %v269_v35  ;;  %491 = vmatpush1.msra.mxu1 %v214_v45  ;;  %v678_v35 = vld [vmem:[#allocation11 + $0xb8] sm:$0xff]  ;;  %v667_v45 = vld [vmem:[#allocation11 + $0x60] sm:$0xff] }
  0x7c   :  { %426 = vmatpush1.msra.mxu0 %v268_v37  ;;  %492 = vmatprep.subr.mxu1 %v211_v47  ;;  %v675_v37 = vld [vmem:[#allocation11 + $0xa0] sm:$0xff]  ;;  %v665_v47 = vld [vmem:[#allocation11 + $0x50] sm:$0xff] }
  0x7d   :  { %427 = vmatprep.subr.mxu0 %v265_v39  ;;  %493 = vmatpush1.msra.mxu1 %v210_v49  ;;  %v673_v39 = vld [vmem:[#allocation11 + $0x90] sm:$0xff]  ;;  %v663_v49 = vld [vmem:[#allocation11 + $0x40] sm:$0xff] }
  0x7e   :  { %428 = vmatpush1.msra.mxu0 %v264_v41  ;;  %494 = vmatprep.subr.mxu1 %v207_v51  ;;  %v671_v41 = vld [vmem:[#allocation11 + $0x80] sm:$0xff]  ;;  %v661_v51 = vld [vmem:[#allocation11 + $0x30] sm:$0xff] }
  0x7f   :  { %539 = vmatprep.subr.mxu0 %v261_v43  ;;  %462 = vmatmul.mubr.f32.vlgmr.msra.gmra.mxu0 %v1149_v58  ;;  %v669_v43 = vld [vmem:[#allocation11 + $0x70] sm:$0xff] }
  0x80   :  { %540 = vmatpush1.msra.mxu0 %v260_v44  ;;  %532 = vmatprep.mubr.f32.mxu1 %v1063_v0  ;;  %v668_v44 = vld [vmem:[#allocation11 + $0x68] sm:$0xff] }
  0x81   :  { %541 = vmatprep.subr.mxu0 %v257_v46  ;;  %603 = vmatprep.mubr.f32.mxu0 %v1063_v0  ;;  %v666_v46 = vld [vmem:[#allocation11 + $0x58] sm:$0xff] }
  0x82   :  { %542 = vmatpush1.msra.mxu0 %v256_v48  ;;  %495 = vmatpush1.msra.mxu1 %v206_v12  ;;  %v664_v48 = vld [vmem:[#allocation11 + $0x48] sm:$0xff] }
  0x83   :  { %543 = vmatprep.subr.mxu0 %v253_v50  ;;  %496 = vmatprep.subr.mxu1 %v203_v14  ;;  %v662_v50 = vld [vmem:[#allocation11 + $0x38] sm:$0xff] }
  0x84   :  { %544 = vmatpush1.msra.mxu0 %v252_v52  ;;  %497 = vmatpush1.msra.mxu1 %v202_v16  ;;  %v660_v52 = vld [vmem:[#allocation11 + $0x28] sm:$0xff] }
  0x85   :  { %545 = vmatprep.subr.mxu0 %v249_v53  ;;  %498 = vmatprep.subr.mxu1 %v199_v18  ;;  %v659_v53 = vld [vmem:[#allocation11 + $0x20] sm:$0xff] }
  0x86   :  { %546 = vmatpush1.msra.mxu0 %v248_v54  ;;  %499 = vmatpush1.msra.mxu1 %v198_v20  ;;  %v658_v54 = vld [vmem:[#allocation11 + $0x18] sm:$0xff] }
  0x87   :  { %547 = vmatprep.subr.mxu0 %v245_v55  ;;  %699 = vmatprep.subr.mxu1 %v686_v27  ;;  %v657_v55 = vld [vmem:[#allocation11 + $0x10] sm:$0xff] }
  0x88   :  { %548 = vmatpush1.msra.mxu0 %v244_v56  ;;  %v656_v56 = vld [vmem:[#allocation11 + $0x8] sm:$0xff] }
  0x89   :  { %549 = vmatprep.subr.mxu0 %v241_v57  ;;  %v655_v57 = vld [vmem:[#allocation11] sm:$0xff] }
  0x8a   :  { %550 = vmatpush1.msra.mxu0 %v240_v59  ;;  %v612_v59 = vlaneseq }
  0x8b   :  { %551 = vmatprep.subr.mxu0 %v237_v60 }
  0x8c   :  { %552 = vmatpush1.msra.mxu0 %v236_v61  ;;  %v1160_v60 = vshrl.u32 %v612_v59, 7 }
  0x8d   :  { %553 = vmatprep.subr.mxu0 %v233_v62 }
  0x8e   :  { %554 = vmatpush1.msra.mxu0 %v232_v63  ;;  %v614_v62 = vsub.s32 0, %v1160_v60  ;;  %v610_v63 = vld [vmem:[%s1188_s5] sm:$0xf]  ;;  %v626_v18 = vsub.s32 3, %v1160_v60  ;;  %v622_v20 = vsub.s32 2, %v1160_v60 }
  0x8f   :  { %555 = vmatprep.subr.mxu0 %v229_v1 }
  0x90   :  { %556 = vmatpush1.msra.mxu0 %v228_v2  ;;  %v615_v2 = vrot.slane %v610_v63, %v614_v62 }
  0x91   :  { %557 = vmatprep.subr.mxu0 %v225_v3 }
  0x92   :  { %558 = vmatpush1.msra.mxu0 %v224_v4 }
  0x93   :  { %559 = vmatprep.subr.mxu0 %v221_v5  ;;  %v618_v5 = vsub.s32 1, %v1160_v60 }
  0x94   :  { %560 = vmatpush1.msra.mxu0 %v220_v6 }
  0x95   :  { %561 = vmatprep.subr.mxu0 %v217_v7 }
  0x96   :  { %562 = vmatpush1.msra.mxu0 %v216_v8 }
  0x97   :  { %563 = vmatprep.subr.mxu0 %v213_v9 }
  0x98   :  { %564 = vmatpush1.msra.mxu0 %v212_v10  ;;  %v619_v10 = vrot.slane %v610_v63, %v618_v5 }
  0x99   :  { %565 = vmatprep.subr.mxu0 %v209_v11 }
  0x9a   :  { %566 = vmatpush1.msra.mxu0 %v208_v13 }
  0x9b   :  { %567 = vmatprep.subr.mxu0 %v205_v15 }
  0x9c   :  { %568 = vmatpush1.msra.mxu0 %v204_v17 }
  0x9d   :  { %569 = vmatprep.subr.mxu0 %v201_v19 }
  0x9e   :  { %570 = vmatpush1.msra.mxu0 %v200_v21 }
 0x11f   :  { %v193_v23 = vpop.f32.mrf.mxu0 }
 0x120   :  { %v194_v24 = vadd.f32 %v832_v22, %v193_v23  ;;  %v627_v23 = vrot.slane %v610_v63, %v626_v18 }
 0x121   :  { %v887_v25 = vpop.f32.mrf.mxu0 }
 0x122   :  { %v197_v26 = vmax.f32 %v194_v24, 0.0  ;;  %v392_v61 = vpop.f32.mrf.mxu1  ;;  %v623_v25 = vrot.slane %v610_v63, %v622_v20 }
 0x124   :  { %533 = vmatmul.mubr.f32.vlgmr.msra.gmra.mxu1 %v197_v26  ;;  %604 = vmatmul.mubr.f32.vlgmr.msra.gmra.mxu0 %v197_v26  ;;  %v394_v1 = vpop.f32.mrf.mxu1 }
 0x125   :  { %763 = vmatprep.mubr.f32.mxu1 %v1063_v0  ;;  %700 = vmatpush1.msra.mxu1 %v685_v28  ;;  %v676_v0 = vld [vmem:[#allocation11 + $0xa8] sm:$0xff] }
 0x126   :  { %701 = vmatprep.subr.mxu1 %v684_v29 }
 0x127   :  { %702 = vmatpush1.msra.mxu1 %v683_v30 }
 0x128   :  { %703 = vmatprep.subr.mxu1 %v682_v31 }
 0x129   :  { %704 = vmatpush1.msra.mxu1 %v681_v32 }
 0x12a   :  { %705 = vmatprep.subr.mxu1 %v680_v33 }
 0x12b   :  { %706 = vmatpush1.msra.mxu1 %v679_v34 }
 0x12c   :  { %707 = vmatprep.subr.mxu1 %v678_v35 }
 0x12d   :  { %708 = vmatpush1.msra.mxu1 %v677_v36 }
 0x12e   :  { %709 = vmatprep.subr.mxu1 %v676_v0 }
 0x12f   :  { %710 = vmatpush1.msra.mxu1 %v675_v37  ;;  %v687_v37 = vld [vmem:[%s1190_s7] sm:$0x3] }
 0x130   :  { %711 = vmatprep.subr.mxu1 %v674_v38  ;;  %v696_v38 = vrot.slane %v687_v37, %v618_v5 }
 0x131   :  { %712 = vmatpush1.msra.mxu1 %v673_v39 }
 0x132   :  { %713 = vmatprep.subr.mxu1 %v672_v40 }
 0x133   :  { %714 = vmatpush1.msra.mxu1 %v671_v41 }
 0x134   :  { %715 = vmatprep.subr.mxu1 %v670_v42 }
 0x135   :  { %716 = vmatpush1.msra.mxu1 %v669_v43 }
 0x136   :  { %717 = vmatprep.subr.mxu1 %v668_v44 }
 0x137   :  { %718 = vmatpush1.msra.mxu1 %v667_v45 }
 0x138   :  { %719 = vmatprep.subr.mxu1 %v666_v46 }
 0x139   :  { %720 = vmatpush1.msra.mxu1 %v665_v47 }
 0x13a   :  { %721 = vmatprep.subr.mxu1 %v664_v48 }
 0x13b   :  { %722 = vmatpush1.msra.mxu1 %v663_v49 }
 0x13c   :  { %723 = vmatprep.subr.mxu1 %v662_v50 }
 0x13d   :  { %724 = vmatpush1.msra.mxu1 %v661_v51 }
 0x13e   :  { %725 = vmatprep.subr.mxu1 %v660_v52 }
 0x13f   :  { %726 = vmatpush1.msra.mxu1 %v659_v53  ;;  %v463_v13 = vpop.f32.mrf.mxu0  ;;  %v692_v53 = vrot.slane %v687_v37, %v614_v62 }
 0x140   :  { %727 = vmatprep.subr.mxu1 %v658_v54 }
 0x141   :  { %728 = vmatpush1.msra.mxu1 %v657_v55  ;;  %v465_v15 = vpop.f32.mrf.mxu0  ;;  %v102_v55 = vld [vmem:[#allocation3 + $0x10] sm:$0xff] }
 0x142   :  { %729 = vmatprep.subr.mxu1 %v656_v56 }
 0x143   :  { %730 = vmatpush1.msra.mxu1 %v655_v57 }
 0x1e4   :  { %v534_v3 = vpop.f32.mrf.mxu1  ;;  %v605_v17 = vpop.f32.mrf.mxu0 }
 0x1e5   :  { %v535_v4 = vadd.f32 %v534_v3, %v392_v61  ;;  %v606_v24 = vadd.f32 %v605_v17, %v463_v13 }
 0x1e6   :  { %v536_v6 = vpop.f32.mrf.mxu1  ;;  %v607_v19 = vpop.f32.mrf.mxu0 }
 0x1e7   :  { %v632_v7 = vadd.f32 %v615_v2, %v535_v4  ;;  %v537_v9 = vadd.f32 %v536_v6, %v394_v1  ;;  %v608_v22 = vadd.f32 %v607_v19, %v465_v15  ;;  %v634_v29 = vadd.f32 %v623_v25, %v606_v24 }
 0x1e8   :  { %v810_v1 = vstv %s1191_s8  ;;  %v790_v6 = vmul.f32 %v102_v55, %v102_v55  ;;  %s1065_s8 = smov [#allocation12]  }
 0x1e9   :  { %v833_v8 = vmul.f32 -1.442695, %v632_v7  ;;  %v633_v11 = vadd.f32 %v619_v10, %v537_v9  ;;  %v635_v27 = vadd.f32 %v627_v23, %v608_v22  ;;  %s821_s19 = sshll.u32 %s1065_s8, 4  ;;  %s822_s19 = int_to_ptr.vmem [resolvable:$true] %s821_s19 }
 0x1ea   :  { %v791_v9 = vmul.f32 -0.5, %v790_v6  ;;  %s1024_s20 = scalar_lea.vmem %s822_s19, 384  ;;  %p1029_p12 = scmp.lt.s32.totalorder %s822_s19, %s822_s19 }
 0x1eb   :  { %902 = vpow2.f32 %v833_v8  ;;  %v834_v12 = vmul.f32 -1.442695, %v633_v11  ;;  %p1025_p11 = scmp.ne.s32.totalorder %s822_s19, %s1024_s20  ;;  %p1030_p13 = scmp.lt.s32.totalorder %s1024_s20, %s1024_s20 }
 0x1ed   :  { %904 = vpow2.f32 %v834_v12  ;;  %p1031_p0 = por %p1030_p13, %p1029_p12 }
 0x1ef   :  { %p1032_p1 = pnand %p1031_p0, %p1025_p11 }
 0x1f8   :  { %v903_v14 = vpop.eup %902 }
 0x1f9   :  { %v642_v16 = vadd.f32 1.0, %v903_v14 }
 0x1fa   :  { %v905_v21 = vpop.eup %904 }
 0x1fb   :  { %906 = vrcp.f32 %v642_v16  ;;  %v643_v26 = vadd.f32 1.0, %v905_v21 }
 0x1fd   :  { %908 = vrcp.f32 %v643_v26 }
 0x208   :  { %v907_v28 = vpop.eup %906 }
 0x209   :  { %v648_v30 = vmul.f32 %v907_v28, %v635_v27 }
 0x20a   :  { %v909_v32 = vpop.eup %908 }
 0x20b   :  { %v649_v31 = vadd.f32 %v648_v30, %v634_v29  ;;  %v651_v33 = vsub.f32 1.0, %v909_v32  ;;  %v653_v36 = vmul.f32 %v909_v32, %v1149_v58 }
 0x20d   :  { %910 = vtanh.f32 %v649_v31 }
 0x21a   :  { %v911_v34 = vpop.eup %910 }
 0x21b   :  { %v652_v35 = vmul.f32 %v911_v34, %v651_v33 }
 0x21d   :  { %v654_v0 = vadd.f32 %v653_v36, %v652_v35 }
 0x21f   :  { %764 = vmatmul.mubr.f32.vlgmr.msra.gmra.mxu1 %v654_v0  ;;  %814 = vst [vmem:[#allocation12 + $0x10] sm:$0xff] %v654_v0 }
 0x2df   :  { %v765_v39 = vpop.f32.mrf.mxu1 }
 0x2e0   :  { %v766_v59 = vadd.f32 %v765_v39, %v692_v53 }
 0x2e1   :  { %v767_v40 = vpop.f32.mrf.mxu1 }
 0x2e2   :  { %v768_v41 = vadd.f32 %v767_v40, %v696_v38 }
 0x2e4   :  { %v773_v42 = vand.u32 2147483647, %v768_v41  ;;  %v770_v52 = vmax.f32 %v768_v41, 0.0  ;;  %vm771_vm2 = vcmp.ne.f32.partialorder %v768_v41, %v768_v41 }
 0x2e6   :  { %v774_v43 = vsub.f32 0.0, %v773_v42 }
 0x2e8   :  { %v775_v44 = vmul.f32 1.442695, %v774_v43 }
 0x2ea   :  { %912 = vpow2.f32 %v775_v44 }
 0x2f7   :  { %v913_v45 = vpop.eup %912 }
 0x2f8   :  { %v777_v46 = vadd.f32 1.0, %v913_v45  ;;  %v780_v47 = vmul.f32 -0.5, %v913_v45  ;;  %v783_v48 = vand.u32 2147483647, %v913_v45 }
 0x2fa   :  { %914 = vlog2.f32 %v777_v46  ;;  %v781_v58 = vadd.f32 1.0, %v780_v47  ;;  %vm784_vm1 = vcmp.lt.f32.partialorder %v783_v48, 0.0004427343 }
 0x2fc   :  { %v782_v51 = vmul.f32 %v913_v45, %v781_v58 }
 0x307   :  { %v915_v49 = vpop.eup %914 }
 0x308   :  { %v779_v50 = vmul.f32 0.6931472, %v915_v49 }
 0x30a   :  { %v785_v54 = vsel %vm784_vm1, %v782_v51, %v779_v50 }
 0x30b   :  { %v786_v56 = vadd.f32 %v785_v54, %v770_v52 }
 0x30d   :  { %v787_v57 = vsel %vm771_vm2, %v768_v41, %v786_v56 }
 0x30e   :  { %v788_v61 = vmul.f32 %v787_v57, %v102_v55 }
 0x310   :  { %v789_v63 = vadd.f32 %v788_v61, %v766_v59 }
 0x312   :  { %916 = vtanh.f32 %v789_v63 }
 0x31f   :  { %v917_v2 = vpop.eup %916 }
 0x320   :  { %918 = vtanh.f32 %v917_v2  ;;  %v811_v3 = vmul.f32 %v917_v2, %v810_v1 }
 0x321   :  { %920 = vlog2.f32 %v787_v57 }
 0x322   :  { %812 = vst [vmem:[#allocation12] sm:$0xff] %v811_v3 }
 0x32d   :  { %v919_v60 = vpop.eup %918 }
 0x32e   :  { %v798_v62 = vmul.f32 %v919_v60, %v919_v60  ;;  %v921_v7 = vpop.eup %920 }
 0x32f   :  { %v793_v10 = vmul.f32 0.6931472, %v921_v7 }
 0x330   :  { %v799_v4 = vsub.f32 1e-07, %v798_v62 }
 0x331   :  { %v794_v12 = vsub.f32 %v791_v9, %v793_v10 }
 0x332   :  { %v800_v5 = vadd.f32 1.0, %v799_v4  ;;  %v803_v8 = vmul.f32 -0.5, %v799_v4  ;;  %v806_v13 = vand.u32 2147483647, %v799_v4 }
 0x333   :  { %v835_v17 = vadd.f32 -0.9189385, %v794_v12 }
 0x334   :  { %922 = vlog2.f32 %v800_v5  ;;  %v804_v11 = vadd.f32 1.0, %v803_v8  ;;  %vm807_vm3 = vcmp.lt.f32.partialorder %v806_v13, 0.0004427343 }
 0x336   :  { %v805_v16 = vmul.f32 %v804_v11, %v799_v4 }
 0x341   :  { %v923_v14 = vpop.eup %922 }
 0x342   :  { %v802_v15 = vmul.f32 0.6931472, %v923_v14 }
 0x344   :  { %v808_v18 = vsel %vm807_vm3, %v805_v16, %v802_v15 }
 0x345   :  { %v809_v19 = vsub.f32 %v835_v17, %v808_v18 }
 0x347   :  { %813 = vst [vmem:[#allocation12 + $0x8] sm:$0xff] %v809_v19 }
 0x348   :  { %1035 = shalt.err (!%p1032_p1)
}
 0x349   :  { %824 = dma.vmem_to_hbm [thread:$0]  %s822_s19, 384, %s1192_s9, [#allocation5]  }
 0x34a   :  { %1050 = dma.done.wait [#allocation5], 384  }
 0x34b   :  { %1051 = vsyncadd [#allocation5], 4294966912 }
 0x34c   :  { %828 = vsyncpa [#allocation4], 1 }
 0x34d   :  { %829 = vsyncpa [#allocation7], 1 }
 0x34e   :  { %830 = vsyncpa [#allocation10], 1 }
 0x34f   :  { %831 = vsyncpa [#allocation5], 1 }

</bundles_post_ra>
